<compile_context>
chip_gen: v6e
topology: v6e:2x2x1
jax: 0.10.0
libtpu: 0.0.40
codegen_flags: <defaults>
</compile_context>

<pallas_src>
import math

import jax
import jax.numpy as jnp
from jax.experimental import pallas as pl
from jax.experimental.pallas import tpu as pltpu


_NEG_LARGE = -1e30  # "minus infinity" for padded class logits (avoids inf-inf NaN)


def _round_up(x, m):
    return ((x + m - 1) // m) * m


def _cdiv(a, b):
    return -(-a // b)


def _sublane(dtype):
    # Native sublane packing: 8 rows per 32-bit vreg; sub-32-bit dtypes pack more
    # (bf16 -> 16, int8/fp8 -> 32).
    return 8 * max(1, 4 // jnp.dtype(dtype).itemsize)


# ---------------------------------------------------------------------------
# Kernel
# ---------------------------------------------------------------------------
def mlp_classifier_kernel(x_ref, w1_ref, b1_ref, w2_ref, b2_ref, logp_ref, h_ref):
    # ---- Linear1 + ReLU (MXU matmul, f32 accumulation; bias/relu on VPU) ----
    h = jnp.dot(x_ref[...], w1_ref[...], preferred_element_type=jnp.float32)
    h = jnp.maximum(h + b1_ref[...], 0.0)
    h_ref[...] = h.astype(h_ref.dtype)

    # ---- Linear2 (cast h to the weight dtype so the bf16 path hits the fast MXU)
    out = jnp.dot(h.astype(w2_ref.dtype), w2_ref[...],
                  preferred_element_type=jnp.float32) + b2_ref[...]
    # b2 pad lanes hold -1e30, so padded class logits are ~-inf and drop out of
    # the reductions below without any explicit mask.

    # ---- log_softmax over the (128-padded) class axis, numerically stable ----
    m = jnp.max(out, axis=1, keepdims=True)           # XLU cross-lane reduce
    z = out - m
    s = jnp.sum(jnp.exp(z), axis=1, keepdims=True)    # EUP exp + XLU reduce
    logp_ref[...] = (z - jnp.log(s)).astype(logp_ref.dtype)


# ---------------------------------------------------------------------------
# Parameter preparation (hoisted out of the per-call forward path)
# ---------------------------------------------------------------------------
def prepare_params(w1, b1, w2, b2, *, compute_dtype=jnp.bfloat16):
    """Pad/cast the weights once. w1: [F, F]; b1: [F]; w2: [F, C]; b2: [C].

    compute_dtype=bfloat16 is the recommended path on v5e/v6e/v7x (MXU peak,
    half the weight DMA). float32 is the debug / exact-match path.
    """
    F = w1.shape[0]
    C = w2.shape[1]
    Fp = _round_up(F, 128)
    Cp = _round_up(C, 128)
    cdt = jnp.dtype(compute_dtype)

    w1_p = jnp.zeros((Fp, Fp), cdt).at[:F, :F].set(w1.astype(cdt))
    b1_p = jnp.zeros((1, Fp), jnp.float32).at[0, :F].set(b1.astype(jnp.float32))
    w2_p = jnp.zeros((Fp, Cp), cdt).at[:F, :C].set(w2.astype(cdt))
    # Padded class lanes get -1e30 so they act as -inf logits in the softmax.
    b2_p = jnp.full((1, Cp), _NEG_LARGE, jnp.float32).at[0, :C].set(
        b2.astype(jnp.float32))

    return dict(w1=w1_p, b1=b1_p, w2=w2_p, b2=b2_p,
                nfeat=F, nclass=C, nfeat_pad=Fp, nclass_pad=Cp,
                compute_dtype=cdt)


# ---------------------------------------------------------------------------
# VMEM budgeting / tile selection
# ---------------------------------------------------------------------------
def _vmem_capacity_bytes():
    try:
        return int(pltpu.get_tpu_info().vmem_capacity_bytes)
    except Exception:
        return 64 * 1024 * 1024  # v7x-safe fallback (per-TC capacity)


def _estimate_vmem_bytes(tile_n, Fp, Cp, itm, h_itm):
    # Resident weights: single-buffered (pl.Buffered(1), constant index_map).
    weights = (Fp * Fp + Fp * Cp) * itm + (Fp + Cp) * 4
    # Pipelined row tiles: double-buffered in/out.
    tiles = 2 * tile_n * Fp * itm          # x tile
    tiles += 2 * tile_n * Fp * h_itm       # h output tile
    tiles += 2 * tile_n * Cp * 4           # logp output tile
    # In-kernel temporaries.
    temps = tile_n * Fp * 4                # f32 h intermediate
    if itm < 4:
        temps += tile_n * Fp * itm         # h cast for the second matmul
    temps += 3 * tile_n * Cp * 4           # logits / shifted / exp temps
    return weights + tiles + temps + (2 << 20)   # Mosaic internal scratch headroom


def _choose_tile_n(N, sublane, tile_cap):
    n_tiles = _cdiv(N, tile_cap)
    # >=2 tiles so both v7x TensorCores get work (near-free on 1-core chips);
    # even tile counts so neither core gets a lone straggler tile.
    if n_tiles == 1 and N > sublane:
        n_tiles = 2
    if n_tiles > 1 and n_tiles % 2 == 1:
        n_tiles += 1
    # Balanced tile size (avoids a nearly-all-padding last tile).
    return max(sublane, _round_up(_cdiv(N, n_tiles), sublane))


# ---------------------------------------------------------------------------
# Forward wrapper
# ---------------------------------------------------------------------------
def mlp_classifier_forward(x, params, *, tile_n=512, h_dtype=None):
    """x: [N, F]; params: output of prepare_params.

    Returns (logp [N, C] f32, h [N, F] in h_dtype).
    h_dtype defaults to the compute dtype (bf16 h halves the largest HBM stream
    on the bf16 path); pass jnp.float32 to force a full-precision h output.
    """
    N, F = x.shape
    assert F == params["nfeat"], "x feature dim does not match the prepared weights"
    C = params["nclass"]
    Fp, Cp = params["nfeat_pad"], params["nclass_pad"]
    cdt = params["compute_dtype"]
    itm = cdt.itemsize
    h_dt = jnp.dtype(h_dtype) if h_dtype is not None else cdt
    h_itm = h_dt.itemsize

    sub = _sublane(cdt)

    # --- tile_n: fit the VMEM budget, then balance / megacore-shard the row axis ---
    vmem_cap = _vmem_capacity_bytes()
    usable = int(vmem_cap * 0.85)          # leave headroom for Mosaic scratch
    tile_cap = max(sub, _round_up(min(tile_n, _round_up(N, sub)), sub))
    while (_estimate_vmem_bytes(tile_cap, Fp, Cp, itm, h_itm) > usable
           and tile_cap > sub):
        tile_cap = max(sub, _round_up(tile_cap // 2, sub))
    tile_n = _choose_tile_n(N, sub, tile_cap)
    Np = _round_up(N, tile_n)
    grid = (Np // tile_n,)

    # --- pad x only when needed (weights were pre-padded in prepare_params) ---
    if Np == N and Fp == F and x.dtype == cdt:
        x_p = x
    else:
        x_p = jnp.zeros((Np, Fp), cdt).at[:N, :F].set(x.astype(cdt))

    resident = pl.Buffered(1)   # constant index_map -> no double buffer needed
    in_specs = [
        pl.BlockSpec((tile_n, Fp), lambda i: (i, 0)),                       # x tile
        pl.BlockSpec((Fp, Fp), lambda i: (0, 0), pipeline_mode=resident),   # W1
        pl.BlockSpec((1, Fp), lambda i: (0, 0), pipeline_mode=resident),    # b1
        pl.BlockSpec((Fp, Cp), lambda i: (0, 0), pipeline_mode=resident),   # W2
        pl.BlockSpec((1, Cp), lambda i: (0, 0), pipeline_mode=resident),    # b2
    ]
    out_specs = (
        pl.BlockSpec((tile_n, Cp), lambda i: (i, 0)),   # logp tile
        pl.BlockSpec((tile_n, Fp), lambda i: (i, 0)),   # h tile
    )

    est = _estimate_vmem_bytes(tile_n, Fp, Cp, itm, h_itm)
    vmem_limit = int(min(usable, max(est * 5 // 4, 32 * 1024 * 1024)))
    compiler_params = pltpu.CompilerParams(
        dimension_semantics=("parallel",),
        vmem_limit_bytes=vmem_limit,
    )

    cost = pl.CostEstimate(
        flops=2 * Np * Fp * (Fp + Cp),
        transcendentals=Np * (Cp + 1),                    # exp per class + log
        bytes_accessed=(Np * Fp * itm                     # x
                        + (Fp * Fp + Fp * Cp) * itm       # W1, W2
                        + (Fp + Cp) * 4                   # b1, b2
                        + Np * Fp * h_itm                 # h
                        + Np * Cp * 4),                   # logp
    )

    logp_p, h_p = pl.pallas_call(
        mlp_classifier_kernel,
        out_shape=(
            jax.ShapeDtypeStruct((Np, Cp), jnp.float32),
            jax.ShapeDtypeStruct((Np, Fp), h_dt),
        ),
        grid=grid,
        in_specs=in_specs,
        out_specs=out_specs,
        compiler_params=compiler_params,
        cost_estimate=cost,
    )(x_p, params["w1"], params["b1"], params["w2"], params["b2"])

    # Slice padding back off only when there is any.
    logp = logp_p if (Np == N and Cp == C) else logp_p[:N, :C]
    h = h_p if (Np == N and Fp == F) else h_p[:N, :F]
    return logp, h


# ---------------------------------------------------------------------------
# Init (matches the PyTorch module's reset_parameters)
# ---------------------------------------------------------------------------
def _kaiming_uniform_fan_out(key, shape, a=math.sqrt(5)):
    # nn.init.kaiming_uniform_(w, mode='fan_out', a=sqrt(5)) for a weight of
    # shape [in_features, out_features] (fan_out = shape[1]).
    fan_out = shape[1]
    gain = math.sqrt(2.0 / (1.0 + a * a))
    bound = math.sqrt(3.0) * gain / math.sqrt(fan_out)
    return jax.random.uniform(key, shape, jnp.float32, -bound, bound)


def init_params(key, nfeat, nclass):
    k1, k2, k3, k4 = jax.random.split(key, 4)
    w1 = _kaiming_uniform_fan_out(k1, (nfeat, nfeat))
    stdv1 = 1.0 / math.sqrt(nfeat)
    b1 = jax.random.uniform(k2, (nfeat,), jnp.float32, -stdv1, stdv1)
    w2 = _kaiming_uniform_fan_out(k3, (nfeat, nclass))
    stdv2 = 1.0 / math.sqrt(nclass)
    b2 = jax.random.uniform(k4, (nclass,), jnp.float32, -stdv2, stdv2)
    return w1, b1, w2, b2


if __name__ == "__main__":
    N, NFEAT, NCLASS = 8, 32, 8

    key = jax.random.PRNGKey(0)
    kx, kp = jax.random.split(key)
    x = jax.random.normal(kx, (N, NFEAT), jnp.float32)
    w1, b1, w2, b2 = init_params(kp, NFEAT, NCLASS)

    # Pure-JAX reference (module semantics in eval mode: dropout = identity).
    h_ref = jnp.maximum(x @ w1 + b1, 0.0)
    out_ref = h_ref @ w2 + b2
    logp_ref = jax.nn.log_softmax(out_ref, axis=1)

    # f32 path (debug / exact-match).
    p32 = prepare_params(w1, b1, w2, b2, compute_dtype=jnp.float32)
    logp, h = mlp_classifier_forward(x, p32)
    jax.block_until_ready((logp, h))
    assert jnp.allclose(h, h_ref, atol=1e-5, rtol=1e-5)
    assert jnp.allclose(logp, logp_ref, atol=1e-5, rtol=1e-5)

    # bf16 path (recommended on v5e/v6e/v7x): bf16 matmuls, f32 MXU accumulation,
    # f32 bias/softmax, bf16 h output. Loose tolerance.
    pbf = prepare_params(w1, b1, w2, b2, compute_dtype=jnp.bfloat16)
    logp_bf, h_bf = mlp_classifier_forward(x, pbf)
    jax.block_until_ready((logp_bf, h_bf))
    assert jnp.allclose(h_bf.astype(jnp.float32), h_ref, atol=1e-1, rtol=1e-1)
    assert jnp.allclose(logp_bf, logp_ref, atol=1e-1, rtol=1e-1)

    print("KERNEL_OK")
</pallas_src>

<mosaic_0001>
module attributes {stable_mosaic.version = 11 : i64} {
  func.func @mlp_classifier_kernel(%arg0: i32, %arg1: memref<8x128xf32, #tpu.memory_space<vmem>>, %arg2: memref<128x128xf32, #tpu.memory_space<vmem>>, %arg3: memref<1x128xf32, #tpu.memory_space<vmem>>, %arg4: memref<128x128xf32, #tpu.memory_space<vmem>>, %arg5: memref<1x128xf32, #tpu.memory_space<vmem>>, %arg6: memref<8x128xf32, #tpu.memory_space<vmem>>, %arg7: memref<8x128xf32, #tpu.memory_space<vmem>>) attributes {dimension_semantics = [#tpu.dimension_semantics<parallel>], iteration_bounds = array<i64: 1>, scalar_prefetch = 0 : i64, scratch_operands = 0 : i64, tpu.core_type = #tpu.core_type<tc>, window_params = [{transform_indices = @transform_0, window_bounds = array<i64: 8, 128>}, {pipeline_mode = #tpu.pipeline_mode<synchronous>, transform_indices = @transform_1, window_bounds = array<i64: 128, 128>}, {pipeline_mode = #tpu.pipeline_mode<synchronous>, transform_indices = @transform_2, window_bounds = array<i64: 1, 128>}, {pipeline_mode = #tpu.pipeline_mode<synchronous>, transform_indices = @transform_3, window_bounds = array<i64: 128, 128>}, {pipeline_mode = #tpu.pipeline_mode<synchronous>, transform_indices = @transform_4, window_bounds = array<i64: 1, 128>}, {transform_indices = @transform_5, window_bounds = array<i64: 8, 128>}, {transform_indices = @transform_6, window_bounds = array<i64: 8, 128>}]} {
    %c0 = arith.constant 0 : index
    %c0_0 = arith.constant 0 : index
    %0 = vector.load %arg1[%c0, %c0_0] : memref<8x128xf32, #tpu.memory_space<vmem>>, vector<8x128xf32>
    %c0_1 = arith.constant 0 : index
    %c0_2 = arith.constant 0 : index
    %1 = vector.load %arg2[%c0_1, %c0_2] : memref<128x128xf32, #tpu.memory_space<vmem>>, vector<128x128xf32>
    %cst = arith.constant dense<0.000000e+00> : vector<8x128xf32>
    %2 = tpu.matmul %0, %1, %cst {dimension_numbers = #tpu.dot_dimension_numbers<[1], [0], [0], [1], [0, 0, 1, 1], [], []>} : vector<8x128xf32>, vector<128x128xf32>, vector<8x128xf32> -> vector<8x128xf32>
    %c0_3 = arith.constant 0 : index
    %c0_4 = arith.constant 0 : index
    %3 = vector.load %arg3[%c0_3, %c0_4] : memref<1x128xf32, #tpu.memory_space<vmem>>, vector<1x128xf32>
    %4 = vector.broadcast %3 : vector<1x128xf32> to vector<8x128xf32>
    %5 = arith.addf %2, %4 : vector<8x128xf32>
    %cst_5 = arith.constant 0.000000e+00 : f32
    %6 = vector.broadcast %cst_5 : f32 to vector<8x128xf32>
    %7 = arith.maximumf %5, %6 : vector<8x128xf32>
    %c0_6 = arith.constant 0 : index
    %c0_7 = arith.constant 0 : index
    %8 = vector.load %arg7[%c0_6, %c0_7] : memref<8x128xf32, #tpu.memory_space<vmem>>, vector<8x128xf32>
    tpu.vector_store %arg7[%c0_6, %c0_7], %7 {strides = array<i32>} : memref<8x128xf32, #tpu.memory_space<vmem>>, vector<8x128xf32>,
    %c0_8 = arith.constant 0 : index
    %c0_9 = arith.constant 0 : index
    %9 = vector.load %arg4[%c0_8, %c0_9] : memref<128x128xf32, #tpu.memory_space<vmem>>, vector<128x128xf32>
    %cst_10 = arith.constant dense<0.000000e+00> : vector<8x128xf32>
    %10 = tpu.matmul %7, %9, %cst_10 {dimension_numbers = #tpu.dot_dimension_numbers<[1], [0], [0], [1], [0, 0, 1, 1], [], []>} : vector<8x128xf32>, vector<128x128xf32>, vector<8x128xf32> -> vector<8x128xf32>
    %c0_11 = arith.constant 0 : index
    %c0_12 = arith.constant 0 : index
    %11 = vector.load %arg5[%c0_11, %c0_12] : memref<1x128xf32, #tpu.memory_space<vmem>>, vector<1x128xf32>
    %12 = vector.broadcast %11 : vector<1x128xf32> to vector<8x128xf32>
    %13 = arith.addf %10, %12 : vector<8x128xf32>
    %cst_13 = arith.constant dense<0xFF800000> : vector<8xf32>
    %14 = vector.multi_reduction <maximumf>, %13, %cst_13 [1] : vector<8x128xf32> to vector<8xf32>
    %15 = vector.shape_cast %14 : vector<8xf32> to vector<8x1xf32>
    %16 = vector.broadcast %15 : vector<8x1xf32> to vector<8x128xf32>
    %17 = arith.subf %13, %16 : vector<8x128xf32>
    %18 = math.exp %17 : vector<8x128xf32>
    %cst_14 = arith.constant dense<0.000000e+00> : vector<8xf32>
    %19 = vector.multi_reduction <add>, %18, %cst_14 [1] : vector<8x128xf32> to vector<8xf32>
    %20 = vector.shape_cast %19 : vector<8xf32> to vector<8x1xf32>
    %21 = math.log %20 : vector<8x1xf32>
    %22 = vector.broadcast %21 : vector<8x1xf32> to vector<8x128xf32>
    %23 = arith.subf %17, %22 : vector<8x128xf32>
    %c0_15 = arith.constant 0 : index
    %c0_16 = arith.constant 0 : index
    %24 = vector.load %arg6[%c0_15, %c0_16] : memref<8x128xf32, #tpu.memory_space<vmem>>, vector<8x128xf32>
    tpu.vector_store %arg6[%c0_15, %c0_16], %23 {strides = array<i32>} : memref<8x128xf32, #tpu.memory_space<vmem>>, vector<8x128xf32>,
    return
  }
  func.func @transform_0(%arg0: i32) -> (i32, i32) {
    %c0_i32 = arith.constant 0 : i32
    %c0_i32_0 = arith.constant 0 : i32
    return %arg0, %c0_i32 : i32, i32
  }
  func.func @transform_1(%arg0: i32) -> (i32, i32) {
    %c0_i32 = arith.constant 0 : i32
    %c0_i32_0 = arith.constant 0 : i32
    %c0_i32_1 = arith.constant 0 : i32
    return %c0_i32, %c0_i32_0 : i32, i32
  }
  func.func @transform_2(%arg0: i32) -> (i32, i32) {
    %c0_i32 = arith.constant 0 : i32
    %c0_i32_0 = arith.constant 0 : i32
    %c0_i32_1 = arith.constant 0 : i32
    return %c0_i32, %c0_i32_0 : i32, i32
  }
  func.func @transform_3(%arg0: i32) -> (i32, i32) {
    %c0_i32 = arith.constant 0 : i32
    %c0_i32_0 = arith.constant 0 : i32
    %c0_i32_1 = arith.constant 0 : i32
    return %c0_i32, %c0_i32_0 : i32, i32
  }
  func.func @transform_4(%arg0: i32) -> (i32, i32) {
    %c0_i32 = arith.constant 0 : i32
    %c0_i32_0 = arith.constant 0 : i32
    %c0_i32_1 = arith.constant 0 : i32
    return %c0_i32, %c0_i32_0 : i32, i32
  }
  func.func @transform_5(%arg0: i32) -> (i32, i32) {
    %c0_i32 = arith.constant 0 : i32
    %c0_i32_0 = arith.constant 0 : i32
    return %arg0, %c0_i32 : i32, i32
  }
  func.func @transform_6(%arg0: i32) -> (i32, i32) {
    %c0_i32 = arith.constant 0 : i32
    %c0_i32_0 = arith.constant 0 : i32
    return %arg0, %c0_i32 : i32, i32
  }
}

</mosaic_0001>

<bundles_post_ra>
// kernel: tpu_custom_call.1
= control target key start
LH: loop header
LB: loop body
LE: loop exit
PB: predicated region body
PF: predicated region fallthrough
CT: control target
= control target key end

     0   :  { %12 = vsyncpa [#allocation3], 0  ;;  %s619_s0 = inlined_call_operand.hbm [shape: f32[8,128], index: 0, kind: input, shape index: {}]   ;;  %s620_s1 = inlined_call_operand.hbm [shape: f32[128,128], index: 1, kind: input, shape index: {}]   ;;  %s621_s2 = inlined_call_operand.vmem [shape: f32[1,128], index: 2, kind: input, shape index: {}]   ;;  %s622_s3 = inlined_call_operand.hbm [shape: f32[128,128], index: 3, kind: input, shape index: {}]   ;;  %s623_s4 = inlined_call_operand.vmem [shape: f32[1,128], index: 4, kind: input, shape index: {}]   ;;  %s624_s5 = inlined_call_operand.hbm [shape: f32[8,128], index: 5, kind: output, shape index: {0}]   ;;  %s625_s6 = inlined_call_operand.hbm [shape: f32[8,128], index: 6, kind: output, shape index: {1}]  }
   0x1   :  { %13 = vsyncpa [#allocation6], 0 }
   0x2   :  { %14 = vsyncpa [#allocation4], 0 }
   0x3   :  { %15 = vsyncpa [#allocation10], 0  ;;  %s520_s21 = smov [#allocation5]  }
   0x4   :  { %s31_s22 = sshll.u32 %s520_s21, 4  ;;  %s32_s22 = int_to_ptr.vmem [resolvable:$true] %s31_s22 }
   0x5   :  { %s420_s23 = scalar_lea.vmem %s32_s22, 2048  ;;  %p425_p1 = scmp.lt.s32.totalorder %s32_s22, %s32_s22 }
   0x6   :  { %p421_p0 = scmp.ne.s32.totalorder %s32_s22, %s420_s23  ;;  %p426_p2 = scmp.lt.s32.totalorder %s420_s23, %s420_s23 }
   0x8   :  { %p427_p3 = por %p426_p2, %p425_p1 }
   0xa   :  { %p428_p4 = pnand %p427_p3, %p421_p0 }
   0xc   :  { %431 = shalt.err (!%p428_p4)
}
   0xd   :  { %s521_s24 = smov 128   ;;  %s522_s25 = smov 8  }
   0xe   :  { %37 = dma.hbm_to_vmem [thread:$0]  %s620_s1, 2048, %s32_s22, [#allocation6], %s521_s24, %s521_s24, %s522_s25  }
   0xf   :  { %s523_s28 = smov [#allocation2]   ;;  %s524_s30 = smov [#allocation7]  }
  0x10   :  { %s22_s29 = sshll.u32 %s523_s28, 4  ;;  %s45_s7 = sshll.u32 %s524_s30, 4  ;;  %s23_s29 = int_to_ptr.vmem [resolvable:$true] %s22_s29  ;;  %s46_s7 = int_to_ptr.vmem [resolvable:$true] %s45_s7 }
  0x11   :  { %s440_s8 = scalar_lea.vmem %s23_s29, 128  ;;  %p445_p6 = scmp.lt.s32.totalorder %s23_s29, %s23_s29 }
  0x12   :  { %p441_p5 = scmp.ne.s32.totalorder %s23_s29, %s440_s8  ;;  %p446_p7 = scmp.lt.s32.totalorder %s440_s8, %s440_s8 }
  0x14   :  { %p447_p8 = por %p446_p7, %p445_p6 }
  0x16   :  { %p448_p9 = pnand %p447_p8, %p441_p5 }
  0x18   :  { %451 = shalt.err (!%p448_p9)
}
  0x19   :  { %25 = dma.hbm_to_vmem [thread:$0]  %s619_s0, 128, %s23_s29, [#allocation3]  }
  0x1a   :  { %s460_s11 = scalar_lea.vmem %s46_s7, 2048  ;;  %p465_p11 = scmp.lt.s32.totalorder %s46_s7, %s46_s7 }
  0x1b   :  { %p461_p10 = scmp.ne.s32.totalorder %s46_s7, %s460_s11  ;;  %p466_p12 = scmp.lt.s32.totalorder %s460_s11, %s460_s11 }
  0x1d   :  { %p467_p13 = por %p466_p12, %p465_p11 }
  0x1f   :  { %p468_p0 = pnand %p467_p13, %p461_p10 }
  0x21   :  { %471 = shalt.err (!%p468_p0)
}
  0x22   :  { %51 = dma.hbm_to_vmem [thread:$0]  %s622_s3, 2048, %s46_s7, [#allocation6], %s521_s24, %s521_s24, %s522_s25  }
  0x23   :  { %512 = dma.done.wait [#allocation3], 128  }
  0x24   :  { %513 = vsyncadd [#allocation3], 4294967168 }
  0x25   :  { %514 = dma.done.wait [#allocation6], 4096  }
  0x26   :  { %515 = vsyncadd [#allocation6], 4294963200  ;;  %v525_v0 = vmov 0.0   ;;  %vm526_vm0 = vmmov 0   ;;  %v79_v1 = vld [vmem:[#allocation5 + $0x78] sm:$0xff]  ;;  %v78_v2 = vld [vmem:[#allocation5 + $0x70] sm:$0xff] }
  0x27   :  { %329 = vmatprep.subr.mxu0 %v525_v0  ;;  %361 = vmatprep.mubr.msk.f32.mxu0 %vm526_vm0, %v525_v0  ;;  %v77_v3 = vld [vmem:[#allocation5 + $0x68] sm:$0xff]  ;;  %v76_v4 = vld [vmem:[#allocation5 + $0x60] sm:$0xff]  ;;  %v174_v5 = vld [vmem:[#allocation7 + $0x78] sm:$0xff] }
  0x28   :  { %364 = vmatprep.subr.mxu1 %v525_v0  ;;  %396 = vmatprep.mubr.msk.f32.mxu1 %vm526_vm0, %v525_v0  ;;  %v75_v6 = vld [vmem:[#allocation5 + $0x58] sm:$0xff]  ;;  %v173_v7 = vld [vmem:[#allocation7 + $0x70] sm:$0xff]  ;;  %v172_v8 = vld [vmem:[#allocation7 + $0x68] sm:$0xff] }
  0x29   :  { %330 = vmatpush3.msra.mxu0 %v79_v1  ;;  %365 = vmatpush3.msra.mxu1 %v174_v5  ;;  %v74_v9 = vld [vmem:[#allocation5 + $0x50] sm:$0xff]  ;;  %v171_v10 = vld [vmem:[#allocation7 + $0x60] sm:$0xff]  ;;  %v73_v11 = vld [vmem:[#allocation5 + $0x48] sm:$0xff] }
  0x2a   :  { %331 = vmatprep.subr.mxu0 %v525_v0  ;;  %366 = vmatprep.subr.mxu1 %v525_v0  ;;  %v170_v12 = vld [vmem:[#allocation7 + $0x58] sm:$0xff]  ;;  %v72_v13 = vld [vmem:[#allocation5 + $0x40] sm:$0xff]  ;;  %v169_v14 = vld [vmem:[#allocation7 + $0x50] sm:$0xff] }
  0x2b   :  { %332 = vmatpush3.msra.mxu0 %v78_v2  ;;  %367 = vmatpush3.msra.mxu1 %v173_v7  ;;  %v71_v15 = vld [vmem:[#allocation5 + $0x38] sm:$0xff]  ;;  %v168_v16 = vld [vmem:[#allocation7 + $0x48] sm:$0xff]  ;;  %v70_v17 = vld [vmem:[#allocation5 + $0x30] sm:$0xff] }
  0x2c   :  { %333 = vmatprep.subr.mxu0 %v525_v0  ;;  %368 = vmatprep.subr.mxu1 %v525_v0  ;;  %v167_v18 = vld [vmem:[#allocation7 + $0x40] sm:$0xff]  ;;  %v69_v19 = vld [vmem:[#allocation5 + $0x28] sm:$0xff]  ;;  %v166_v20 = vld [vmem:[#allocation7 + $0x38] sm:$0xff] }
  0x2d   :  { %334 = vmatpush3.msra.mxu0 %v77_v3  ;;  %369 = vmatpush3.msra.mxu1 %v172_v8  ;;  %v68_v21 = vld [vmem:[#allocation5 + $0x20] sm:$0xff]  ;;  %v165_v22 = vld [vmem:[#allocation7 + $0x30] sm:$0xff]  ;;  %v67_v23 = vld [vmem:[#allocation5 + $0x18] sm:$0xff] }
  0x2e   :  { %335 = vmatprep.subr.mxu0 %v525_v0  ;;  %370 = vmatprep.subr.mxu1 %v525_v0  ;;  %v164_v24 = vld [vmem:[#allocation7 + $0x28] sm:$0xff]  ;;  %v66_v25 = vld [vmem:[#allocation5 + $0x10] sm:$0xff]  ;;  %v163_v26 = vld [vmem:[#allocation7 + $0x20] sm:$0xff] }
  0x2f   :  { %336 = vmatpush3.msra.mxu0 %v76_v4  ;;  %371 = vmatpush3.msra.mxu1 %v171_v10  ;;  %v65_v27 = vld [vmem:[#allocation5 + $0x8] sm:$0xff]  ;;  %v162_v28 = vld [vmem:[#allocation7 + $0x18] sm:$0xff]  ;;  %v64_v29 = vld [vmem:[#allocation5] sm:$0xff] }
  0x30   :  { %337 = vmatprep.subr.mxu0 %v525_v0  ;;  %372 = vmatprep.subr.mxu1 %v525_v0  ;;  %v63_v30 = vld [vmem:[#allocation2] sm:$0xff]  ;;  %v161_v31 = vld [vmem:[#allocation7 + $0x10] sm:$0xff]  ;;  %v160_v32 = vld [vmem:[#allocation7 + $0x8] sm:$0xff] }
  0x31   :  { %338 = vmatpush3.msra.mxu0 %v75_v6  ;;  %373 = vmatpush3.msra.mxu1 %v170_v12  ;;  %v159_v33 = vld [vmem:[#allocation7] sm:$0xff]  ;;  %v293_v34 = vld [vmem:[%s621_s2] ss:$0 sm:$0xff]  ;;  %s527_s2 = smov [#allocation9]  }
  0x32   :  { %339 = vmatprep.subr.mxu0 %v525_v0  ;;  %374 = vmatprep.subr.mxu1 %v525_v0  ;;  %v294_v39 = vld [vmem:[%s623_s4] ss:$0 sm:$0xff]  ;;  %s279_s15 = sshll.u32 %s527_s2, 4  ;;  %s280_s15 = int_to_ptr.vmem [resolvable:$true] %s279_s15 }
  0x33   :  { %340 = vmatpush3.msra.mxu0 %v74_v9  ;;  %375 = vmatpush3.msra.mxu1 %v169_v14  ;;  %s472_s16 = scalar_lea.vmem %s280_s15, 128  ;;  %p477_p2 = scmp.lt.s32.totalorder %s280_s15, %s280_s15 }
  0x34   :  { %341 = vmatprep.subr.mxu0 %v525_v0  ;;  %376 = vmatprep.subr.mxu1 %v525_v0  ;;  %p473_p1 = scmp.ne.s32.totalorder %s280_s15, %s472_s16  ;;  %p478_p3 = scmp.lt.s32.totalorder %s472_s16, %s472_s16 }
  0x35   :  { %342 = vmatpush3.msra.mxu0 %v73_v11  ;;  %377 = vmatpush3.msra.mxu1 %v168_v16 }
  0x36   :  { %343 = vmatprep.subr.mxu0 %v525_v0  ;;  %378 = vmatprep.subr.mxu1 %v525_v0  ;;  %p479_p4 = por %p478_p3, %p477_p2 }
  0x37   :  { %344 = vmatpush3.msra.mxu0 %v72_v13  ;;  %379 = vmatpush3.msra.mxu1 %v167_v18 }
  0x38   :  { %345 = vmatprep.subr.mxu0 %v525_v0  ;;  %380 = vmatprep.subr.mxu1 %v525_v0  ;;  %p480_p5 = pnand %p479_p4, %p473_p1 }
  0x39   :  { %346 = vmatpush3.msra.mxu0 %v71_v15  ;;  %381 = vmatpush3.msra.mxu1 %v166_v20 }
  0x3a   :  { %347 = vmatprep.subr.mxu0 %v525_v0  ;;  %382 = vmatprep.subr.mxu1 %v525_v0 }
  0x3b   :  { %348 = vmatpush3.msra.mxu0 %v70_v17  ;;  %383 = vmatpush3.msra.mxu1 %v165_v22 }
  0x3c   :  { %349 = vmatprep.subr.mxu0 %v525_v0  ;;  %384 = vmatprep.subr.mxu1 %v525_v0 }
  0x3d   :  { %350 = vmatpush3.msra.mxu0 %v69_v19  ;;  %385 = vmatpush3.msra.mxu1 %v164_v24 }
  0x3e   :  { %351 = vmatprep.subr.mxu0 %v525_v0  ;;  %386 = vmatprep.subr.mxu1 %v525_v0 }
  0x3f   :  { %352 = vmatpush3.msra.mxu0 %v68_v21  ;;  %387 = vmatpush3.msra.mxu1 %v163_v26 }
  0x40   :  { %353 = vmatprep.subr.mxu0 %v525_v0  ;;  %388 = vmatprep.subr.mxu1 %v525_v0 }
  0x41   :  { %354 = vmatpush3.msra.mxu0 %v67_v23  ;;  %389 = vmatpush3.msra.mxu1 %v162_v28 }
  0x42   :  { %355 = vmatprep.subr.mxu0 %v525_v0  ;;  %390 = vmatprep.subr.mxu1 %v525_v0 }
  0x43   :  { %356 = vmatpush3.msra.mxu0 %v66_v25  ;;  %391 = vmatpush3.msra.mxu1 %v161_v31 }
  0x44   :  { %357 = vmatprep.subr.mxu0 %v525_v0  ;;  %392 = vmatprep.subr.mxu1 %v525_v0 }
  0x45   :  { %358 = vmatpush3.msra.mxu0 %v65_v27  ;;  %393 = vmatpush3.msra.mxu1 %v160_v32 }
  0x46   :  { %359 = vmatprep.subr.mxu0 %v525_v0  ;;  %394 = vmatprep.subr.mxu1 %v525_v0 }
  0x47   :  { %360 = vmatpush3.msra.mxu0 %v64_v29  ;;  %395 = vmatpush3.msra.mxu1 %v159_v33 }
  0x48   :  { %362 = vmatmul.mubr.f32.vlgmr.msra.gmra.mxu0 %v63_v30 }
 0x108   :  { %v153_v35 = vpop.f32.mrf.mxu0 }
 0x109   :  { %v154_v36 = vadd.f32 %v293_v34, %v153_v35 }
 0x10a   :  { %v363_v37 = vpop.f32.mrf.mxu0 }
 0x10b   :  { %v157_v38 = vmax.f32 %v154_v36, 0.0 }
 0x10d   :  { %158 = vst [vmem:[#allocation9] sm:$0xff] %v157_v38  ;;  %397 = vmatmul.mubr.f32.vlgmr.msra.gmra.mxu1 %v157_v38 }
 0x1cd   :  { %v248_v40 = vpop.f32.mrf.mxu1 }
 0x1ce   :  { %v249_v41 = vadd.f32 %v294_v39, %v248_v40 }
 0x1cf   :  { %v398_v42 = vpop.f32.mrf.mxu1 }
 0x1d0   :  { %252 = vmax.xlane.f32.xlu0 %v249_v41 }
 0x259   :  { %v253_v43 = vpop.xlane.xlu0 %252 }
 0x25a   :  { %v254_v44 = vsub.f32 %v249_v41, %v253_v43 }
 0x25c   :  { %v255_v45 = vmul.f32 1.442695, %v254_v44 }
 0x25e   :  { %408 = vpow2.f32 %v255_v45 }
 0x26b   :  { %v409_v46 = vpop.eup %408 }
 0x26c   :  { %257 = vadd.xlane.f32.xlu0 %v409_v46 }
 0x26d   :  { %483 = shalt.err (!%p480_p5)
}
 0x26e   :  { %282 = dma.vmem_to_hbm [thread:$0]  %s280_s15, 128, %s625_s6, [#allocation10]  }
 0x26f   :  { %s528_s18 = smov [#allocation8]  }
 0x270   :  { %s269_s19 = sshll.u32 %s528_s18, 4  ;;  %s270_s19 = int_to_ptr.vmem [resolvable:$true] %s269_s19 }
 0x271   :  { %s492_s20 = scalar_lea.vmem %s270_s19, 128  ;;  %p497_p7 = scmp.lt.s32.totalorder %s270_s19, %s270_s19 }
 0x272   :  { %p493_p6 = scmp.ne.s32.totalorder %s270_s19, %s492_s20  ;;  %p498_p8 = scmp.lt.s32.totalorder %s492_s20, %s492_s20 }
 0x274   :  { %p499_p9 = por %p498_p8, %p497_p7 }
 0x276   :  { %p500_p10 = pnand %p499_p9, %p493_p6 }
 0x2f5   :  { %v258_v47 = vpop.xlane.xlu0 %257 }
 0x2f6   :  { %410 = vlog2.f32 %v258_v47 }
 0x303   :  { %v411_v48 = vpop.eup %410 }
 0x304   :  { %v260_v49 = vmul.f32 0.6931472, %v411_v48 }
 0x306   :  { %v261_v50 = vsub.f32 %v254_v44, %v260_v49 }
 0x308   :  { %262 = vst [vmem:[#allocation8] sm:$0xff] %v261_v50 }
 0x309   :  { %503 = shalt.err (!%p500_p10)
}
 0x30a   :  { %272 = dma.vmem_to_hbm [thread:$0]  %s270_s19, 128, %s624_s5, [#allocation4]  }
 0x30b   :  { %516 = dma.done.wait [#allocation4], 128  }
 0x30c   :  { %517 = vsyncadd [#allocation4], 4294967168 }
 0x30d   :  { %518 = dma.done.wait [#allocation10], 128  }
 0x30e   :  { %519 = vsyncadd [#allocation10], 4294967168 }
 0x30f   :  { %289 = vsyncpa [#allocation3], 1 }
 0x310   :  { %290 = vsyncpa [#allocation6], 1 }
 0x311   :  { %291 = vsyncpa [#allocation4], 1 }
 0x312   :  { %292 = vsyncpa [#allocation10], 1 }

</bundles_post_ra>
